<compile_context>
chip_gen: v7x
topology: tpu7x:2x2x1
jax: 0.10.0
libtpu: 0.0.40
codegen_flags: <defaults>
</compile_context>

<pallas_src>
import functools

import numpy as np
import jax
import jax.numpy as jnp
from jax.experimental import pallas as pl
from jax.experimental.pallas import tpu as pltpu


def critic_kernel(xc2_ref, a_ref,
                  w2_ref, b2_ref,
                  wl1_ref, bl1_ref,
                  wl2_ref, bl2_ref,
                  wl4_ref, bl4_ref,
                  wl5_ref, bl5_ref,
                  o_ref, *, shrink):
    f32 = jnp.float32
    s = shrink
    L1, Bt, KC = xc2_ref.shape            # KC = 3*C1
    L2, C2, H = wl1_ref.shape             # linear1 weight staged [L2, C2, H]

    def mm(a, b):
        # cast LHS to the weight dtype (f32 or bf16); accumulate in f32 on MXU
        return jnp.dot(a.astype(b.dtype), b, preferred_element_type=f32)

    # ---- conv2 + ReLU: one K=3*C1 im2col matmul over all (l1, b) rows ----
    # The input block is staged l1-major in the wrapper, so merging the two
    # leading dims is a pure reinterpretation (Bt is a multiple of 16).
    xc2 = xc2_ref[...].reshape(L1 * Bt, KC)
    h2 = jnp.maximum(mm(xc2, w2_ref[...]) + b2_ref[...], 0.0)    # [L1*Bt, C2]
    h2 = h2.reshape(L1, Bt, C2)                                  # free split

    # ---- AvgPool1d(s) #2 fused with linear1 ----
    # Each pooled position l2: contiguous-slab sum (VPU adds) then a
    # [Bt, C2] x [C2, H] matmul with that position's weight slice.
    # No lane concats / flatten relayout; L2 is small (<= ~6) so the static
    # loop is just a handful of MXU calls.
    inv_s = 1.0 / s
    z1 = jnp.zeros((Bt, H), f32) + bl1_ref[...]
    for l2 in range(L2):
        pooled = h2[l2 * s:(l2 + 1) * s].sum(axis=0) * inv_s     # [Bt, C2]
        z1 = z1 + mm(pooled, wl1_ref[l2])
    z1 = jnp.maximum(z1, 0.0)                                    # [Bt, H]

    # ---- linear2 / linear4 (+ReLU), residual add ----
    z2 = jnp.maximum(mm(z1, wl2_ref[...]) + bl2_ref[...], 0.0)   # [Bt, H]
    za = jnp.maximum(mm(a_ref[...], wl4_ref[...]) + bl4_ref[...], 0.0)
    zs = z2 + za                                                 # [Bt, H] f32

    # ---- linear5 via zero-padded [H, 128] weight: lane-dense output block,
    # no [Bt, H] transpose, no M=1 matmul (only lane 0 is meaningful) ----
    o_ref[...] = mm(zs, wl5_ref[...]) + bl5_ref[...]             # [Bt, 128]


def _round_up(x, m):
    return -(-x // m) * m


def critic_forward(state, action_logits, params, shrink_dim=4, use_bf16=False):
    """state: [B, state_dim, state_len] (PyTorch NCL); action_logits: [B, A]."""
    f32 = jnp.float32
    B, Cin, L = state.shape
    s = shrink_dim
    A = action_logits.shape[1]

    (c1w, c1b, c2w, c2b, l1w, l1b, l2w, l2b, l4w, l4b, l5w, l5b) = params
    C1 = c1w.shape[0]          # 32
    C2 = c2w.shape[0]          # 64
    H = l2w.shape[0]           # 256
    L1 = L // s                # pool1 output length (PyTorch truncates)
    L2 = L1 // s               # pool2 output length
    assert l1w.shape[1] == L2 * C2

    # ---- conv1 + ReLU + pool1 hoisted to plain XLA (< 1 MFLOP) ----
    x = state.astype(f32)
    xp = jnp.pad(x, ((0, 0), (0, 0), (1, 1)))
    h1 = sum(jnp.einsum('oi,bil->bol', c1w[:, :, k].astype(f32),
                        xp[:, :, k:k + L]) for k in range(3))
    h1 = jax.nn.relu(h1 + c1b.astype(f32)[None, :, None])        # [B, C1, L]
    p1 = h1[:, :, :L1 * s].reshape(B, C1, L1, s).mean(-1)        # [B, C1, L1]

    # ---- conv2 im2col staged l1-major: [L1, B, 3*C1] (96 lanes, 1.33x pad) ----
    p1t = jnp.transpose(p1, (2, 0, 1))                           # [L1, B, C1]
    zrow = jnp.zeros((1, B, C1), f32)
    xm = jnp.concatenate([zrow, p1t[:-1]], axis=0)               # p1[l1-1]
    xpl = jnp.concatenate([p1t[1:], zrow], axis=0)               # p1[l1+1]
    xc2 = jnp.concatenate([xm, p1t, xpl], axis=-1)               # [L1, B, 3*C1]

    a = action_logits.astype(f32)

    # ---- batch tiling: multiple of 16 rows; >= 2 tiles once B > 16 so the
    # "parallel" batch axis is sharded across v7x's two TensorCores; tile
    # capped at 256 rows to amortize per-step overhead while staying well
    # inside v7x's default scoped VMEM.
    if B <= 16:
        Bt = _round_up(B, 16)
    else:
        Bt = min(256, _round_up(-(-B // 2), 16))
    T = -(-B // Bt)
    Bp = T * Bt
    if Bp != B:
        xc2 = jnp.pad(xc2, ((0, 0), (0, Bp - B), (0, 0)))
        a = jnp.pad(a, ((0, Bp - B), (0, 0)))

    mm_dt = jnp.bfloat16 if use_bf16 else f32
    if use_bf16:
        xc2 = xc2.astype(mm_dt)
        a = a.astype(mm_dt)

    # ---- weight restaging (pure layout plumbing in plain JAX) ----
    # conv2 weight as im2col matrix [3*C1, C2] (row = k*C1 + c)
    W2 = jnp.transpose(c2w, (2, 1, 0)).reshape(3 * C1, C2).astype(mm_dt)
    b2 = c2b.reshape(1, C2).astype(f32)
    # PyTorch flattens [B, C2, L2] channel-major (feature = c*L2 + l2); stage
    # linear1's weight as [L2, C2, H] so the kernel does one matmul per pooled
    # position on an un-relayouted [Bt, C2] slab.
    Wl1 = jnp.transpose(l1w.reshape(H, C2, L2), (2, 1, 0)).astype(mm_dt)
    bl1 = l1b.reshape(1, H).astype(f32)
    Wl2 = l2w.T.astype(mm_dt)
    bl2 = l2b.reshape(1, H).astype(f32)
    Wl4 = l4w.T.astype(mm_dt)
    bl4 = l4b.reshape(1, H).astype(f32)
    # linear5 weight zero-padded to [H, 128]: lane-dense output, no transpose.
    W5 = jnp.zeros((H, 128), f32).at[:, 0].set(l5w.reshape(H)).astype(mm_dt)
    b5 = jnp.zeros((1, 128), f32).at[0, 0].set(l5b[0])

    weights = (W2, b2, Wl1, bl1, Wl2, bl2, Wl4, bl4, W5, b5)

    def w_spec(arr):
        # full-array block, constant index -> fetched once, resident for grid
        return pl.BlockSpec(arr.shape, lambda t, _nd=arr.ndim: (0,) * _nd)

    out = pl.pallas_call(
        functools.partial(critic_kernel, shrink=s),
        out_shape=jax.ShapeDtypeStruct((Bp, 128), jnp.float32),
        grid=(T,),
        in_specs=[pl.BlockSpec((L1, Bt, 3 * C1), lambda t: (0, t, 0)),
                  pl.BlockSpec((Bt, A), lambda t: (t, 0))]
                 + [w_spec(w) for w in weights],
        out_specs=pl.BlockSpec((Bt, 128), lambda t: (t, 0)),
        compiler_params=pltpu.CompilerParams(
            dimension_semantics=("parallel",)),
    )(xc2, a, *weights)

    return out[:B, :1]


def critic_reference(state, action, params, shrink_dim=4):
    """Pure-JAX mirror of the PyTorch forward (NCL layout), for validation."""
    (c1w, c1b, c2w, c2b, l1w, l1b, l2w, l2b, l4w, l4b, l5w, l5b) = params

    def conv1d(x, w, b):
        B, Ci, L = x.shape
        xp = jnp.pad(x, ((0, 0), (0, 0), (1, 1)))
        out = sum(jnp.einsum('oi,bil->bol', w[:, :, k], xp[:, :, k:k + L])
                  for k in range(3))
        return out + b[None, :, None]

    def avgpool(x, s):
        B, C, L = x.shape
        L = (L // s) * s
        return x[:, :, :L].reshape(B, C, L // s, s).mean(-1)

    h = avgpool(jax.nn.relu(conv1d(state, c1w, c1b)), shrink_dim)
    h = avgpool(jax.nn.relu(conv1d(h, c2w, c2b)), shrink_dim)
    h = h.reshape(h.shape[0], -1)
    h = jax.nn.relu(h @ l1w.T + l1b)
    h = jax.nn.relu(h @ l2w.T + l2b)
    ha = jax.nn.relu(action @ l4w.T + l4b)
    return (h + ha) @ l5w.T + l5b


if __name__ == "__main__":
    # small shapes consistent with the module (state_len divisible by 4*4)
    state_dim, state_len, action_dim, shrink = 2, 32, 2, 4
    L2 = state_len // shrink // shrink            # 2
    A = action_dim * state_len                    # 64

    key = jax.random.PRNGKey(0)
    keys = jax.random.split(key, 16)

    def init(k, shape, scale=0.1):
        return scale * jax.random.normal(k, shape, jnp.float32)

    params = (
        init(keys[0], (32, state_dim, 3)), init(keys[1], (32,)),      # conv1
        init(keys[2], (64, 32, 3)),        init(keys[3], (64,)),      # conv2
        init(keys[4], (256, L2 * 64)),     init(keys[5], (256,)),     # linear1
        init(keys[6], (256, 256)),         init(keys[7], (256,)),     # linear2
        init(keys[8], (256, A)),           init(keys[9], (256,)),     # linear4
        init(keys[10], (1, 256)),          init(keys[11], (1,)),      # linear5
    )

    for B in (6, 20):   # single-tile path and multi-tile (T >= 2) path
        ks = jax.random.fold_in(keys[12], B)
        ka = jax.random.fold_in(keys[13], B)
        state = jax.random.normal(ks, (B, state_dim, state_len), jnp.float32)
        action = jax.random.normal(ka, (B, A), jnp.float32)

        ref = critic_reference(state, action, params, shrink)

        # f32 path (default)
        out = jax.block_until_ready(
            critic_forward(state, action, params, shrink))
        assert out.shape == (B, 1)
        np.testing.assert_allclose(np.asarray(out), np.asarray(ref),
                                   rtol=2e-4, atol=2e-4)

        # bf16 matmul path (v6e/v7x friendly), f32 accumulation -> looser tol
        out_bf16 = jax.block_until_ready(
            critic_forward(state, action, params, shrink, use_bf16=True))
        np.testing.assert_allclose(np.asarray(out_bf16), np.asarray(ref),
                                   rtol=5e-2, atol=5e-2)

    print("KERNEL_OK")
</pallas_src>

<mosaic_0001>
module attributes {stable_mosaic.version = 11 : i64} {
  func.func @critic_kernel(%arg0: i32, %arg1: memref<8x16x96xf32, #tpu.memory_space<vmem>>, %arg2: memref<16x64xf32, #tpu.memory_space<vmem>>, %arg3: memref<96x64xf32, #tpu.memory_space<vmem>>, %arg4: memref<1x64xf32, #tpu.memory_space<vmem>>, %arg5: memref<2x64x256xf32, #tpu.memory_space<vmem>>, %arg6: memref<1x256xf32, #tpu.memory_space<vmem>>, %arg7: memref<256x256xf32, #tpu.memory_space<vmem>>, %arg8: memref<1x256xf32, #tpu.memory_space<vmem>>, %arg9: memref<64x256xf32, #tpu.memory_space<vmem>>, %arg10: memref<1x256xf32, #tpu.memory_space<vmem>>, %arg11: memref<256x128xf32, #tpu.memory_space<vmem>>, %arg12: memref<1x128xf32, #tpu.memory_space<vmem>>, %arg13: memref<16x128xf32, #tpu.memory_space<vmem>>) attributes {dimension_semantics = [#tpu.dimension_semantics<parallel>], iteration_bounds = array<i64: 1>, scalar_prefetch = 0 : i64, scratch_operands = 0 : i64, tpu.core_type = #tpu.core_type<tc>, window_params = [{transform_indices = @transform_0, window_bounds = array<i64: 8, 16, 96>}, {transform_indices = @transform_1, window_bounds = array<i64: 16, 64>}, {pipeline_mode = #tpu.pipeline_mode<synchronous>, transform_indices = @transform_2, window_bounds = array<i64: 96, 64>}, {pipeline_mode = #tpu.pipeline_mode<synchronous>, transform_indices = @transform_3, window_bounds = array<i64: 1, 64>}, {pipeline_mode = #tpu.pipeline_mode<synchronous>, transform_indices = @transform_4, window_bounds = array<i64: 2, 64, 256>}, {pipeline_mode = #tpu.pipeline_mode<synchronous>, transform_indices = @transform_5, window_bounds = array<i64: 1, 256>}, {pipeline_mode = #tpu.pipeline_mode<synchronous>, transform_indices = @transform_6, window_bounds = array<i64: 256, 256>}, {pipeline_mode = #tpu.pipeline_mode<synchronous>, transform_indices = @transform_7, window_bounds = array<i64: 1, 256>}, {pipeline_mode = #tpu.pipeline_mode<synchronous>, transform_indices = @transform_8, window_bounds = array<i64: 64, 256>}, {pipeline_mode = #tpu.pipeline_mode<synchronous>, transform_indices = @transform_9, window_bounds = array<i64: 1, 256>}, {pipeline_mode = #tpu.pipeline_mode<synchronous>, transform_indices = @transform_10, window_bounds = array<i64: 256, 128>}, {pipeline_mode = #tpu.pipeline_mode<synchronous>, transform_indices = @transform_11, window_bounds = array<i64: 1, 128>}, {transform_indices = @transform_12, window_bounds = array<i64: 16, 128>}]} {
    %c0 = arith.constant 0 : index
    %c0_0 = arith.constant 0 : index
    %c0_1 = arith.constant 0 : index
    %0 = vector.load %arg1[%c0, %c0_0, %c0_1] : memref<8x16x96xf32, #tpu.memory_space<vmem>>, vector<8x16x96xf32>
    %1 = vector.shape_cast %0 : vector<8x16x96xf32> to vector<128x96xf32>
    %c0_2 = arith.constant 0 : index
    %c0_3 = arith.constant 0 : index
    %2 = vector.load %arg3[%c0_2, %c0_3] : memref<96x64xf32, #tpu.memory_space<vmem>>, vector<96x64xf32>
    %cst = arith.constant dense<0.000000e+00> : vector<128x64xf32>
    %3 = tpu.matmul %1, %2, %cst {dimension_numbers = #tpu.dot_dimension_numbers<[1], [0], [0], [1], [0, 0, 1, 1], [], []>} : vector<128x96xf32>, vector<96x64xf32>, vector<128x64xf32> -> vector<128x64xf32>
    %c0_4 = arith.constant 0 : index
    %c0_5 = arith.constant 0 : index
    %4 = vector.load %arg4[%c0_4, %c0_5] : memref<1x64xf32, #tpu.memory_space<vmem>>, vector<1x64xf32>
    %5 = vector.broadcast %4 : vector<1x64xf32> to vector<128x64xf32>
    %6 = arith.addf %3, %5 : vector<128x64xf32>
    %cst_6 = arith.constant 0.000000e+00 : f32
    %7 = vector.broadcast %cst_6 : f32 to vector<128x64xf32>
    %8 = arith.maximumf %6, %7 : vector<128x64xf32>
    %9 = vector.shape_cast %8 : vector<128x64xf32> to vector<8x16x64xf32>
    %cst_7 = arith.constant 0.000000e+00 : f32
    %10 = vector.broadcast %cst_7 : f32 to vector<16x256xf32>
    %c0_8 = arith.constant 0 : index
    %c0_9 = arith.constant 0 : index
    %11 = vector.load %arg6[%c0_8, %c0_9] : memref<1x256xf32, #tpu.memory_space<vmem>>, vector<1x256xf32>
    %12 = vector.broadcast %11 : vector<1x256xf32> to vector<16x256xf32>
    %13 = arith.addf %10, %12 : vector<16x256xf32>
    %14 = vector.extract_strided_slice %9 {offsets = [0, 0, 0], sizes = [4, 16, 64], strides = [1, 1, 1]} : vector<8x16x64xf32> to vector<4x16x64xf32>
    %cst_10 = arith.constant dense<0.000000e+00> : vector<16x64xf32>
    %15 = vector.multi_reduction <add>, %14, %cst_10 [0] : vector<4x16x64xf32> to vector<16x64xf32>
    %cst_11 = arith.constant 2.500000e-01 : f32
    %16 = vector.broadcast %cst_11 : f32 to vector<16x64xf32>
    %17 = arith.mulf %15, %16 : vector<16x64xf32>
    %c0_12 = arith.constant 0 : index
    %c0_13 = arith.constant 0 : index
    %c0_14 = arith.constant 0 : index
    %18 = vector.load %arg5[%c0_12, %c0_13, %c0_14] : memref<2x64x256xf32, #tpu.memory_space<vmem>>, vector<1x64x256xf32>
    %19 = vector.shape_cast %18 : vector<1x64x256xf32> to vector<64x256xf32>
    %cst_15 = arith.constant dense<0.000000e+00> : vector<16x256xf32>
    %20 = tpu.matmul %17, %19, %cst_15 {dimension_numbers = #tpu.dot_dimension_numbers<[1], [0], [0], [1], [0, 0, 1, 1], [], []>} : vector<16x64xf32>, vector<64x256xf32>, vector<16x256xf32> -> vector<16x256xf32>
    %21 = arith.addf %13, %20 : vector<16x256xf32>
    %22 = vector.extract_strided_slice %9 {offsets = [4, 0, 0], sizes = [4, 16, 64], strides = [1, 1, 1]} : vector<8x16x64xf32> to vector<4x16x64xf32>
    %cst_16 = arith.constant dense<0.000000e+00> : vector<16x64xf32>
    %23 = vector.multi_reduction <add>, %22, %cst_16 [0] : vector<4x16x64xf32> to vector<16x64xf32>
    %cst_17 = arith.constant 2.500000e-01 : f32
    %24 = vector.broadcast %cst_17 : f32 to vector<16x64xf32>
    %25 = arith.mulf %23, %24 : vector<16x64xf32>
    %c1 = arith.constant 1 : index
    %c0_18 = arith.constant 0 : index
    %c0_19 = arith.constant 0 : index
    %26 = vector.load %arg5[%c1, %c0_18, %c0_19] : memref<2x64x256xf32, #tpu.memory_space<vmem>>, vector<1x64x256xf32>
    %27 = vector.shape_cast %26 : vector<1x64x256xf32> to vector<64x256xf32>
    %cst_20 = arith.constant dense<0.000000e+00> : vector<16x256xf32>
    %28 = tpu.matmul %25, %27, %cst_20 {dimension_numbers = #tpu.dot_dimension_numbers<[1], [0], [0], [1], [0, 0, 1, 1], [], []>} : vector<16x64xf32>, vector<64x256xf32>, vector<16x256xf32> -> vector<16x256xf32>
    %29 = arith.addf %21, %28 : vector<16x256xf32>
    %cst_21 = arith.constant 0.000000e+00 : f32
    %30 = vector.broadcast %cst_21 : f32 to vector<16x256xf32>
    %31 = arith.maximumf %29, %30 : vector<16x256xf32>
    %c0_22 = arith.constant 0 : index
    %c0_23 = arith.constant 0 : index
    %32 = vector.load %arg7[%c0_22, %c0_23] : memref<256x256xf32, #tpu.memory_space<vmem>>, vector<256x256xf32>
    %cst_24 = arith.constant dense<0.000000e+00> : vector<16x256xf32>
    %33 = tpu.matmul %31, %32, %cst_24 {dimension_numbers = #tpu.dot_dimension_numbers<[1], [0], [0], [1], [0, 0, 1, 1], [], []>} : vector<16x256xf32>, vector<256x256xf32>, vector<16x256xf32> -> vector<16x256xf32>
    %c0_25 = arith.constant 0 : index
    %c0_26 = arith.constant 0 : index
    %34 = vector.load %arg8[%c0_25, %c0_26] : memref<1x256xf32, #tpu.memory_space<vmem>>, vector<1x256xf32>
    %35 = vector.broadcast %34 : vector<1x256xf32> to vector<16x256xf32>
    %36 = arith.addf %33, %35 : vector<16x256xf32>
    %cst_27 = arith.constant 0.000000e+00 : f32
    %37 = vector.broadcast %cst_27 : f32 to vector<16x256xf32>
    %38 = arith.maximumf %36, %37 : vector<16x256xf32>
    %c0_28 = arith.constant 0 : index
    %c0_29 = arith.constant 0 : index
    %39 = vector.load %arg2[%c0_28, %c0_29] : memref<16x64xf32, #tpu.memory_space<vmem>>, vector<16x64xf32>
    %c0_30 = arith.constant 0 : index
    %c0_31 = arith.constant 0 : index
    %40 = vector.load %arg9[%c0_30, %c0_31] : memref<64x256xf32, #tpu.memory_space<vmem>>, vector<64x256xf32>
    %cst_32 = arith.constant dense<0.000000e+00> : vector<16x256xf32>
    %41 = tpu.matmul %39, %40, %cst_32 {dimension_numbers = #tpu.dot_dimension_numbers<[1], [0], [0], [1], [0, 0, 1, 1], [], []>} : vector<16x64xf32>, vector<64x256xf32>, vector<16x256xf32> -> vector<16x256xf32>
    %c0_33 = arith.constant 0 : index
    %c0_34 = arith.constant 0 : index
    %42 = vector.load %arg10[%c0_33, %c0_34] : memref<1x256xf32, #tpu.memory_space<vmem>>, vector<1x256xf32>
    %43 = vector.broadcast %42 : vector<1x256xf32> to vector<16x256xf32>
    %44 = arith.addf %41, %43 : vector<16x256xf32>
    %cst_35 = arith.constant 0.000000e+00 : f32
    %45 = vector.broadcast %cst_35 : f32 to vector<16x256xf32>
    %46 = arith.maximumf %44, %45 : vector<16x256xf32>
    %47 = arith.addf %38, %46 : vector<16x256xf32>
    %c0_36 = arith.constant 0 : index
    %c0_37 = arith.constant 0 : index
    %48 = vector.load %arg11[%c0_36, %c0_37] : memref<256x128xf32, #tpu.memory_space<vmem>>, vector<256x128xf32>
    %cst_38 = arith.constant dense<0.000000e+00> : vector<16x128xf32>
    %49 = tpu.matmul %47, %48, %cst_38 {dimension_numbers = #tpu.dot_dimension_numbers<[1], [0], [0], [1], [0, 0, 1, 1], [], []>} : vector<16x256xf32>, vector<256x128xf32>, vector<16x128xf32> -> vector<16x128xf32>
    %c0_39 = arith.constant 0 : index
    %c0_40 = arith.constant 0 : index
    %50 = vector.load %arg12[%c0_39, %c0_40] : memref<1x128xf32, #tpu.memory_space<vmem>>, vector<1x128xf32>
    %51 = vector.broadcast %50 : vector<1x128xf32> to vector<16x128xf32>
    %52 = arith.addf %49, %51 : vector<16x128xf32>
    %c0_41 = arith.constant 0 : index
    %c0_42 = arith.constant 0 : index
    %53 = vector.load %arg13[%c0_41, %c0_42] : memref<16x128xf32, #tpu.memory_space<vmem>>, vector<16x128xf32>
    tpu.vector_store %arg13[%c0_41, %c0_42], %52 {strides = array<i32>} : memref<16x128xf32, #tpu.memory_space<vmem>>, vector<16x128xf32>,
    return
  }
  func.func @transform_0(%arg0: i32) -> (i32, i32, i32) {
    %c0_i32 = arith.constant 0 : i32
    %c0_i32_0 = arith.constant 0 : i32
    %c0_i32_1 = arith.constant 0 : i32
    return %c0_i32, %arg0, %c0_i32_0 : i32, i32, i32
  }
  func.func @transform_1(%arg0: i32) -> (i32, i32) {
    %c0_i32 = arith.constant 0 : i32
    %c0_i32_0 = arith.constant 0 : i32
    return %arg0, %c0_i32 : i32, i32
  }
  func.func @transform_2(%arg0: i32) -> (i32, i32) {
    %c0_i32 = arith.constant 0 : i32
    %c0_i32_0 = arith.constant 0 : i32
    %c0_i32_1 = arith.constant 0 : i32
    return %c0_i32, %c0_i32_0 : i32, i32
  }
  func.func @transform_3(%arg0: i32) -> (i32, i32) {
    %c0_i32 = arith.constant 0 : i32
    %c0_i32_0 = arith.constant 0 : i32
    %c0_i32_1 = arith.constant 0 : i32
    return %c0_i32, %c0_i32_0 : i32, i32
  }
  func.func @transform_4(%arg0: i32) -> (i32, i32, i32) {
    %c0_i32 = arith.constant 0 : i32
    %c0_i32_0 = arith.constant 0 : i32
    %c0_i32_1 = arith.constant 0 : i32
    %c0_i32_2 = arith.constant 0 : i32
    return %c0_i32, %c0_i32_0, %c0_i32_1 : i32, i32, i32
  }
  func.func @transform_5(%arg0: i32) -> (i32, i32) {
    %c0_i32 = arith.constant 0 : i32
    %c0_i32_0 = arith.constant 0 : i32
    %c0_i32_1 = arith.constant 0 : i32
    return %c0_i32, %c0_i32_0 : i32, i32
  }
  func.func @transform_6(%arg0: i32) -> (i32, i32) {
    %c0_i32 = arith.constant 0 : i32
    %c0_i32_0 = arith.constant 0 : i32
    %c0_i32_1 = arith.constant 0 : i32
    return %c0_i32, %c0_i32_0 : i32, i32
  }
  func.func @transform_7(%arg0: i32) -> (i32, i32) {
    %c0_i32 = arith.constant 0 : i32
    %c0_i32_0 = arith.constant 0 : i32
    %c0_i32_1 = arith.constant 0 : i32
    return %c0_i32, %c0_i32_0 : i32, i32
  }
  func.func @transform_8(%arg0: i32) -> (i32, i32) {
    %c0_i32 = arith.constant 0 : i32
    %c0_i32_0 = arith.constant 0 : i32
    %c0_i32_1 = arith.constant 0 : i32
    return %c0_i32, %c0_i32_0 : i32, i32
  }
  func.func @transform_9(%arg0: i32) -> (i32, i32) {
    %c0_i32 = arith.constant 0 : i32
    %c0_i32_0 = arith.constant 0 : i32
    %c0_i32_1 = arith.constant 0 : i32
    return %c0_i32, %c0_i32_0 : i32, i32
  }
  func.func @transform_10(%arg0: i32) -> (i32, i32) {
    %c0_i32 = arith.constant 0 : i32
    %c0_i32_0 = arith.constant 0 : i32
    %c0_i32_1 = arith.constant 0 : i32
    return %c0_i32, %c0_i32_0 : i32, i32
  }
  func.func @transform_11(%arg0: i32) -> (i32, i32) {
    %c0_i32 = arith.constant 0 : i32
    %c0_i32_0 = arith.constant 0 : i32
    %c0_i32_1 = arith.constant 0 : i32
    return %c0_i32, %c0_i32_0 : i32, i32
  }
  func.func @transform_12(%arg0: i32) -> (i32, i32) {
    %c0_i32 = arith.constant 0 : i32
    %c0_i32_0 = arith.constant 0 : i32
    return %arg0, %c0_i32 : i32, i32
  }
}

</mosaic_0001>

<bundles_post_ra>
// kernel: tpu_custom_call.1
= control target key start
LH: loop header
LB: loop body
LE: loop exit
PB: predicated region body
PF: predicated region fallthrough
CT: control target
= control target key end

     0   :  { %17 = vsyncpa [#allocation3], 0  ;;  %s1786_s0 = inlined_call_operand.vmem [shape: f32[8,16,96], index: 0, kind: input, shape index: {}]   ;;  %s1787_s1 = inlined_call_operand.vmem [shape: f32[16,64], index: 1, kind: input, shape index: {}]   ;;  %s1788_s2 = inlined_call_operand.vmem [shape: f32[96,64], index: 2, kind: input, shape index: {}]   ;;  %s1789_s3 = inlined_call_operand.vmem [shape: f32[1,64], index: 3, kind: input, shape index: {}]   ;;  %s1790_s4 = inlined_call_operand.hbm [shape: f32[2,64,256], index: 4, kind: input, shape index: {}]   ;;  %s1791_s5 = inlined_call_operand.vmem [shape: f32[1,256], index: 5, kind: input, shape index: {}]   ;;  %s1792_s6 = inlined_call_operand.hbm [shape: f32[256,256], index: 6, kind: input, shape index: {}]   ;;  %s1793_s7 = inlined_call_operand.vmem [shape: f32[1,256], index: 7, kind: input, shape index: {}]   ;;  %s1794_s8 = inlined_call_operand.hbm [shape: f32[64,256], index: 8, kind: input, shape index: {}]   ;;  %s1795_s9 = inlined_call_operand.vmem [shape: f32[1,256], index: 9, kind: input, shape index: {}]   ;;  %s1796_s10 = inlined_call_operand.hbm [shape: f32[256,128], index: 10, kind: input, shape index: {}]   ;;  %s1797_s11 = inlined_call_operand.vmem [shape: f32[1,128], index: 11, kind: input, shape index: {}]   ;;  %s1798_s12 = inlined_call_operand.hbm [shape: f32[16,128], index: 12, kind: output, shape index: {}]  }
   0x1   :  { %18 = vsyncpa [#allocation6], 0 }
   0x2   :  { %19 = vsyncpa [#allocation9], 0 }
   0x3   :  { %20 = vsyncpa [#allocation4], 0  ;;  %s1455_s21 = smov [#allocation5]   ;;  %s1456_s23 = smov [#allocation2]  }
   0x4   :  { %s48_s22 = sshll.u32 %s1455_s21, 4  ;;  %s34_s24 = sshll.u32 %s1456_s23, 4  ;;  %s49_s22 = int_to_ptr.vmem [resolvable:$true] %s48_s22  ;;  %s1530_s24 = int_to_ptr.vmem [resolvable:$true] %s34_s24 }
   0x5   :  { %s1337_s27 = scalar_lea.hbm %s1792_s6, 8192 }
   0x6   :  { %p1338_p0 = scmp.ne.s32.totalorder %s1792_s6, %s1337_s27  ;;  %p1341_p1 = scmp.lt.u32.totalorder %s1337_s27, %s1792_s6 }
   0x8   :  { %p1343_p2 = pnand %p1341_p1, %p1338_p0 }
   0xa   :  { %1346 = shalt.err (!%p1343_p2)
}
   0xb   :  { %s1347_s14 = scalar_lea.vmem %s49_s22, 8192  ;;  %p1352_p4 = scmp.lt.s32.totalorder %s49_s22, %s49_s22 }
   0xc   :  { %p1348_p3 = scmp.ne.s32.totalorder %s49_s22, %s1347_s14  ;;  %p1353_p5 = scmp.lt.s32.totalorder %s1347_s14, %s1347_s14 }
   0xe   :  { %p1354_p6 = por %p1353_p5, %p1352_p4 }
  0x10   :  { %p1355_p7 = pnand %p1354_p6, %p1348_p3 }
  0x12   :  { %1358 = shalt.err (!%p1355_p7)
}
  0x13   :  { %s1457_s15 = smov 256   ;;  %s1458_s16 = smov 16  }
  0x14   :  { %54 = dma.hbm_to_vmem [thread:$0]  %s1792_s6, 8192, %s49_s22, [#allocation6], %s1457_s15, %s1457_s15, %s1458_s16  }
  0x15   :  { %s1359_s21 = scalar_lea.hbm %s1790_s4, 4096 }
  0x16   :  { %p1360_p8 = scmp.ne.s32.totalorder %s1790_s4, %s1359_s21  ;;  %p1363_p9 = scmp.lt.u32.totalorder %s1359_s21, %s1790_s4 }
  0x18   :  { %p1365_p10 = pnand %p1363_p9, %p1360_p8 }
  0x1a   :  { %1368 = shalt.err (!%p1365_p10)
}
  0x1b   :  { %s1369_s28 = scalar_lea.vmem %s1530_s24, 4096  ;;  %p1374_p12 = scmp.lt.s32.totalorder %s1530_s24, %s1530_s24 }
  0x1c   :  { %p1370_p11 = scmp.ne.s32.totalorder %s1530_s24, %s1369_s28  ;;  %p1375_p13 = scmp.lt.s32.totalorder %s1369_s28, %s1369_s28 }
  0x1e   :  { %p1376_p0 = por %p1375_p13, %p1374_p12 }
  0x20   :  { %p1377_p1 = pnand %p1376_p0, %p1370_p11 }
  0x22   :  { %1380 = shalt.err (!%p1377_p1)
}
  0x23   :  { %40 = dma.hbm_to_vmem [thread:$0]  %s1790_s4, 4096, %s1530_s24, [#allocation3], %s1457_s15, %s1457_s15, %s1458_s16  }
  0x24   :  { %s1459_s29 = smov [#allocation7]   ;;  %s1460_s13 = smov [#allocation8]  }
  0x25   :  { %s62_s30 = sshll.u32 %s1459_s29, 4  ;;  %s76_s14 = sshll.u32 %s1460_s13, 4  ;;  %s63_s30 = int_to_ptr.vmem [resolvable:$true] %s62_s30  ;;  %s1567_s14 = int_to_ptr.vmem [resolvable:$true] %s76_s14 }
  0x26   :  { %s1381_s19 = scalar_lea.hbm %s1794_s8, 2048 }
  0x27   :  { %p1382_p2 = scmp.ne.s32.totalorder %s1794_s8, %s1381_s19  ;;  %p1385_p3 = scmp.lt.u32.totalorder %s1381_s19, %s1794_s8 }
  0x29   :  { %p1387_p4 = pnand %p1385_p3, %p1382_p2 }
  0x2b   :  { %1390 = shalt.err (!%p1387_p4)
}
  0x2c   :  { %s1391_s4 = scalar_lea.vmem %s63_s30, 2048  ;;  %p1396_p6 = scmp.lt.s32.totalorder %s63_s30, %s63_s30 }
  0x2d   :  { %p1392_p5 = scmp.ne.s32.totalorder %s63_s30, %s1391_s4  ;;  %p1397_p7 = scmp.lt.s32.totalorder %s1391_s4, %s1391_s4 }
  0x2f   :  { %p1398_p8 = por %p1397_p7, %p1396_p6 }
  0x31   :  { %p1399_p9 = pnand %p1398_p8, %p1392_p5 }
  0x33   :  { %1402 = shalt.err (!%p1399_p9)
}
  0x34   :  { %68 = dma.hbm_to_vmem [thread:$0]  %s1794_s8, 2048, %s63_s30, [#allocation6], %s1457_s15, %s1457_s15, %s1458_s16  }
  0x35   :  { %s1403_s6 = scalar_lea.hbm %s1796_s10, 4096 }
  0x36   :  { %p1404_p10 = scmp.ne.s32.totalorder %s1796_s10, %s1403_s6  ;;  %p1407_p11 = scmp.lt.u32.totalorder %s1403_s6, %s1796_s10 }
  0x38   :  { %p1409_p12 = pnand %p1407_p11, %p1404_p10 }
  0x3a   :  { %1412 = shalt.err (!%p1409_p12)
}
  0x3b   :  { %s1413_s18 = scalar_lea.vmem %s1567_s14, 4096  ;;  %p1418_p0 = scmp.lt.s32.totalorder %s1567_s14, %s1567_s14 }
  0x3c   :  { %p1414_p13 = scmp.ne.s32.totalorder %s1567_s14, %s1413_s18  ;;  %p1419_p1 = scmp.lt.s32.totalorder %s1413_s18, %s1413_s18 }
  0x3e   :  { %p1420_p2 = por %p1419_p1, %p1418_p0 }
  0x40   :  { %p1421_p3 = pnand %p1420_p2, %p1414_p13 }
  0x42   :  { %1424 = shalt.err (!%p1421_p3)
}
  0x43   :  { %s1461_s8 = smov 128   ;;  %s1462_s15 = smov 8  }
  0x44   :  { %82 = dma.hbm_to_vmem [thread:$0]  %s1796_s10, 4096, %s1567_s14, [#allocation9], %s1461_s8, %s1461_s8, %s1462_s15  }
  0x45   :  { %1447 = dma.done.wait [#allocation3], 4096  }
  0x46   :  { %1448 = vsyncadd [#allocation3], 4294963200 }
  0x47   :  { %1449 = dma.done.wait [#allocation6], 10240  }
  0x48   :  { %1450 = vsyncadd [#allocation6], 4294957056 }
  0x49   :  { %1451 = dma.done.wait [#allocation9], 4096  }
  0x4a   :  { %1452 = vsyncadd [#allocation9], 4294963200  ;;  %v113_v0 = vld [vmem:[%s1788_s2] sm:$0xff]  ;;  %v114_v1 = vld [vmem:[%s1788_s2 + $0x8] sm:$0xff]  ;;  %vm132_vm0 = vcmask 785408   ;;  %v1463_v61 = vmov 0.0  }
  0x4b   :  { %v115_v2 = vld [vmem:[%s1788_s2 + $0x10] sm:$0xff]  ;;  %v1151_v3 = vpack.c.bf16 %v114_v1, %v113_v0  ;;  %v116_v4 = vld [vmem:[%s1788_s2 + $0x18] sm:$0xff]  ;;  %v117_v6 = vld [vmem:[%s1788_s2 + $0x20] sm:$0xff]  ;;  %459 = vmatprep.mubr.f32.mxu1 %v1463_v61  ;;  %vm356_vm1 = vcmask 523264   ;;  %s1464_s21 = smov [#allocation10]  }
  0x4c   :  { %v1155_v5 = vpack.c.bf16 %v116_v4, %v115_v2  ;;  %v118_v7 = vld [vmem:[%s1788_s2 + $0x28] sm:$0xff]  ;;  %v97_v8 = vld [vmem:[%s1786_s0] sm:$0xff]  ;;  %v119_v10 = vld [vmem:[%s1788_s2 + $0x30] sm:$0xff]  ;;  %s999_s23 = sshll.u32 %s1464_s21, 4  ;;  %s1000_s23 = int_to_ptr.vmem [resolvable:$true] %s999_s23 }
  0x4d   :  { %1152 = vmatprep.subr.bf16.mxu0 %v1151_v3  ;;  %v1159_v9 = vpack.c.bf16 %v118_v7, %v117_v6  ;;  %1127 = vmatprep.mubr.msk.f32.mxu0 %vm132_vm0, %v97_v8  ;;  %v120_v11 = vld [vmem:[%s1788_s2 + $0x38] sm:$0xff]  ;;  %v121_v13 = vld [vmem:[%s1788_s2 + $0x40] sm:$0xff]  ;;  %v122_v14 = vld [vmem:[%s1788_s2 + $0x48] sm:$0xff]  ;;  %s1425_s25 = scalar_lea.vmem %s1000_s23, 256  ;;  %p1430_p5 = scmp.lt.s32.totalorder %s1000_s23, %s1000_s23 }
  0x4e   :  { %1154 = vmatpush3.bf16.msra.mxu0 %v1151_v3  ;;  %v1163_v12 = vpack.c.bf16 %v120_v11, %v119_v10  ;;  %v1167_v15 = vpack.c.bf16 %v122_v14, %v121_v13  ;;  %v123_v16 = vld [vmem:[%s1788_s2 + $0x50] sm:$0xff]  ;;  %v124_v17 = vld [vmem:[%s1788_s2 + $0x58] sm:$0xff]  ;;  %v98_v19 = vld [vmem:[%s1786_s0 + $0x8] sm:$0xff]  ;;  %p1426_p4 = scmp.ne.s32.totalorder %s1000_s23, %s1425_s25  ;;  %p1431_p6 = scmp.lt.s32.totalorder %s1425_s25, %s1425_s25 }
  0x4f   :  { %1156 = vmatprep.subr.bf16.mxu0 %v1155_v5  ;;  %v1171_v18 = vpack.c.bf16 %v124_v17, %v123_v16  ;;  %v99_v20 = vld [vmem:[%s1786_s0 + $0x10] sm:$0xff]  ;;  %v100_v21 = vld [vmem:[%s1786_s0 + $0x18] sm:$0xff]  ;;  %v101_v22 = vld [vmem:[%s1786_s0 + $0x20] sm:$0xff] }
  0x50   :  { %v102_v23 = vld [vmem:[%s1786_s0 + $0x28] sm:$0xff]  ;;  %v103_v24 = vld [vmem:[%s1786_s0 + $0x30] sm:$0xff]  ;;  %v104_v25 = vld [vmem:[%s1786_s0 + $0x38] sm:$0xff]  ;;  %p1432_p7 = por %p1431_p6, %p1430_p5 }
  0x51   :  { %v105_v26 = vld [vmem:[%s1786_s0 + $0x40] sm:$0xff]  ;;  %v106_v27 = vld [vmem:[%s1786_s0 + $0x48] sm:$0xff]  ;;  %v107_v28 = vld [vmem:[%s1786_s0 + $0x50] sm:$0xff] }
  0x52   :  { %1158 = vmatpush3.bf16.msra.mxu0 %v1155_v5  ;;  %v108_v29 = vld [vmem:[%s1786_s0 + $0x58] sm:$0xff]  ;;  %v109_v30 = vld [vmem:[%s1786_s0 + $0x60] sm:$0xff]  ;;  %v110_v31 = vld [vmem:[%s1786_s0 + $0x68] sm:$0xff]  ;;  %p1433_p8 = pnand %p1432_p7, %p1426_p4 }
  0x53   :  { %1160 = vmatprep.subr.bf16.mxu0 %v1159_v9  ;;  %v111_v32 = vld [vmem:[%s1786_s0 + $0x70] sm:$0xff]  ;;  %v112_v33 = vld [vmem:[%s1786_s0 + $0x78] sm:$0xff]  ;;  %v374_v34 = vld [vmem:[#allocation2 + $0x8] sm:$0xff] }
  0x54   :  { %v376_v35 = vld [vmem:[#allocation2 + $0x18] sm:$0xff]  ;;  %v373_v37 = vld [vmem:[#allocation2] sm:$0xff]  ;;  %v375_v38 = vld [vmem:[#allocation2 + $0x10] sm:$0xff] }
  0x55   :  { %v1175_v36 = vpack.c.bf16 %v376_v35, %v374_v34  ;;  %v1177_v39 = vpack.c.bf16 %v375_v38, %v373_v37  ;;  %v378_v40 = vld [vmem:[#allocation2 + $0x28] sm:$0xff]  ;;  %v380_v41 = vld [vmem:[#allocation2 + $0x38] sm:$0xff]  ;;  %v377_v43 = vld [vmem:[#allocation2 + $0x20] sm:$0xff] }
  0x56   :  { %1162 = vmatpush3.bf16.msra.mxu0 %v1159_v9  ;;  %v1179_v42 = vpack.c.bf16 %v380_v41, %v378_v40  ;;  %v379_v44 = vld [vmem:[#allocation2 + $0x30] sm:$0xff]  ;;  %v382_v46 = vld [vmem:[#allocation2 + $0x48] sm:$0xff]  ;;  %v384_v47 = vld [vmem:[#allocation2 + $0x58] sm:$0xff] }
  0x57   :  { %1164 = vmatprep.subr.bf16.mxu0 %v1163_v12  ;;  %1176 = vmatprep.subr.bf16.mxu1 %v1175_v36  ;;  %v1181_v45 = vpack.c.bf16 %v379_v44, %v377_v43  ;;  %v1183_v48 = vpack.c.bf16 %v384_v47, %v382_v46  ;;  %v381_v49 = vld [vmem:[#allocation2 + $0x40] sm:$0xff]  ;;  %v383_v50 = vld [vmem:[#allocation2 + $0x50] sm:$0xff]  ;;  %v386_v52 = vld [vmem:[#allocation2 + $0x68] sm:$0xff] }
  0x58   :  { %1178 = vmatpush1.bf16.msra.mxu1 %v1177_v39  ;;  %v1185_v51 = vpack.c.bf16 %v383_v50, %v381_v49  ;;  %v388_v53 = vld [vmem:[#allocation2 + $0x78] sm:$0xff]  ;;  %v385_v55 = vld [vmem:[#allocation2 + $0x60] sm:$0xff]  ;;  %v387_v56 = vld [vmem:[#allocation2 + $0x70] sm:$0xff] }
  0x59   :  { %1180 = vmatprep.subr.bf16.mxu1 %v1179_v42  ;;  %v1187_v54 = vpack.c.bf16 %v388_v53, %v386_v52  ;;  %v1189_v57 = vpack.c.bf16 %v387_v56, %v385_v55  ;;  %v494_v58 = vld [vmem:[#allocation2 + $0x88] sm:$0xff]  ;;  %v496_v59 = vld [vmem:[#allocation2 + $0x98] sm:$0xff]  ;;  %v600_v0 = vld [vmem:[#allocation5] sm:$0xff] }
  0x5a   :  { %1166 = vmatpush3.bf16.msra.mxu0 %v1163_v12  ;;  %v1191_v60 = vpack.c.bf16 %v496_v59, %v494_v58  ;;  %v601_v62 = vld [vmem:[#allocation5 + $0x8] sm:$0xff]  ;;  %v603_v63 = vld [vmem:[#allocation5 + $0x18] sm:$0xff]  ;;  %v602_v2 = vld [vmem:[#allocation5 + $0x10] sm:$0xff] }
  0x5b   :  { %1168 = vmatprep.subr.bf16.mxu0 %v1167_v15  ;;  %v1207_v1 = vpack.c.bf16 %v603_v63, %v601_v62  ;;  %v605_v3 = vld [vmem:[#allocation5 + $0x28] sm:$0xff]  ;;  %v607_v4 = vld [vmem:[#allocation5 + $0x38] sm:$0xff]  ;;  %v1209_v5 = vpack.c.bf16 %v602_v2, %v600_v0  ;;  %v604_v7 = vld [vmem:[#allocation5 + $0x20] sm:$0xff] }
  0x5c   :  { %1182 = vmatpush1.bf16.msra.mxu1 %v1181_v45  ;;  %v1211_v6 = vpack.c.bf16 %v607_v4, %v605_v3  ;;  %v606_v8 = vld [vmem:[#allocation5 + $0x30] sm:$0xff]  ;;  %v609_v9 = vld [vmem:[#allocation5 + $0x48] sm:$0xff]  ;;  %v611_v10 = vld [vmem:[#allocation5 + $0x58] sm:$0xff] }
  0x5d   :  { %1184 = vmatprep.subr.bf16.mxu1 %v1183_v48  ;;  %v1213_v11 = vpack.c.bf16 %v606_v8, %v604_v7  ;;  %v1215_v12 = vpack.c.bf16 %v611_v10, %v609_v9  ;;  %v608_v13 = vld [vmem:[#allocation5 + $0x40] sm:$0xff]  ;;  %v610_v14 = vld [vmem:[#allocation5 + $0x50] sm:$0xff]  ;;  %v615_v16 = vld [vmem:[#allocation5 + $0x78] sm:$0xff] }
  0x5e   :  { %1170 = vmatpush3.bf16.msra.mxu0 %v1167_v15  ;;  %v613_v15 = vld [vmem:[#allocation5 + $0x68] sm:$0xff]  ;;  %v1217_v17 = vpack.c.bf16 %v610_v14, %v608_v13  ;;  %v627_v34 = vld [vmem:[#allocation5 + $0xd8] sm:$0xff]  ;;  %v624_v37 = vld [vmem:[#allocation5 + $0xc0] sm:$0xff] }
  0x5f   :  { %1172 = vmatprep.subr.bf16.mxu0 %v1171_v18  ;;  %v626_v38 = vld [vmem:[#allocation5 + $0xd0] sm:$0xff]  ;;  %v629_v39 = vld [vmem:[#allocation5 + $0xe8] sm:$0xff]  ;;  %v631_v40 = vld [vmem:[#allocation5 + $0xf8] sm:$0xff] }
  0x60   :  { %1186 = vmatpush1.bf16.msra.mxu1 %v1185_v51  ;;  %v1233_v41 = vpack.c.bf16 %v626_v38, %v624_v37  ;;  %v1235_v42 = vpack.c.bf16 %v631_v40, %v629_v39  ;;  %v628_v43 = vld [vmem:[#allocation5 + $0xe0] sm:$0xff]  ;;  %v630_v44 = vld [vmem:[#allocation5 + $0xf0] sm:$0xff]  ;;  %v633_v45 = vld [vmem:[#allocation5 + $0x108] sm:$0xff] }
  0x61   :  { %1188 = vmatprep.subr.bf16.mxu1 %v1187_v54  ;;  %v635_v46 = vld [vmem:[#allocation5 + $0x118] sm:$0xff]  ;;  %v1237_v47 = vpack.c.bf16 %v630_v44, %v628_v43  ;;  %v632_v49 = vld [vmem:[#allocation5 + $0x100] sm:$0xff]  ;;  %v634_v50 = vld [vmem:[#allocation5 + $0x110] sm:$0xff] }
  0x62   :  { %1174 = vmatpush3.bf16.msra.mxu0 %v1171_v18  ;;  %v1219_v18 = vpack.c.bf16 %v615_v16, %v613_v15  ;;  %v1239_v48 = vpack.c.bf16 %v635_v46, %v633_v45  ;;  %v637_v51 = vld [vmem:[#allocation5 + $0x128] sm:$0xff]  ;;  %v639_v52 = vld [vmem:[#allocation5 + $0x138] sm:$0xff]  ;;  %v1241_v53 = vpack.c.bf16 %v634_v50, %v632_v49  ;;  %v636_v55 = vld [vmem:[#allocation5 + $0x120] sm:$0xff] }
  0x63   :  { %1208 = vmatprep.subr.bf16.mxu0 %v1207_v1  ;;  %v1243_v54 = vpack.c.bf16 %v639_v52, %v637_v51  ;;  %v638_v56 = vld [vmem:[#allocation5 + $0x130] sm:$0xff]  ;;  %v643_v58 = vld [vmem:[#allocation5 + $0x158] sm:$0xff]  ;;  %v640_v62 = vld [vmem:[#allocation5 + $0x140] sm:$0xff] }
  0x64   :  { %1190 = vmatpush1.bf16.msra.mxu1 %v1189_v57  ;;  %v641_v57 = vld [vmem:[#allocation5 + $0x148] sm:$0xff]  ;;  %v1245_v59 = vpack.c.bf16 %v638_v56, %v636_v55  ;;  %v642_v63 = vld [vmem:[#allocation5 + $0x150] sm:$0xff]  ;;  %v647_v1 = vld [vmem:[#allocation5 + $0x178] sm:$0xff] }
  0x65   :  { %1128 = vmatmul.mubr.msk.f32.vlgmr.msra.gmra.mrb[0].mxu0 %vm132_vm0, %v98_v19  ;;  %1192 = vmatprep.subr.bf16.mxu1 %v1191_v60  ;;  %v612_v19 = vld [vmem:[#allocation5 + $0x60] sm:$0xff]  ;;  %v1247_v60 = vpack.c.bf16 %v643_v58, %v641_v57  ;;  %v645_v0 = vld [vmem:[#allocation5 + $0x168] sm:$0xff]  ;;  %v1249_v2 = vpack.c.bf16 %v642_v63, %v640_v62  ;;  %v651_v7 = vld [vmem:[#allocation5 + $0x198] sm:$0xff] }
  0x66   :  { %1130 = vmatprep.mubr.msk.f32.mxu0 %vm132_vm0, %v99_v20  ;;  %1210 = vmatpush1.bf16.msra.mxu0 %v1209_v5  ;;  %v614_v20 = vld [vmem:[#allocation5 + $0x70] sm:$0xff]  ;;  %v1251_v3 = vpack.c.bf16 %v647_v1, %v645_v0  ;;  %v644_v4 = vld [vmem:[#allocation5 + $0x160] sm:$0xff]  ;;  %v655_v13 = vld [vmem:[#allocation5 + $0x1b8] sm:$0xff] }
  0x67   :  { %1212 = vmatprep.subr.bf16.mxu0 %v1211_v6  ;;  %v646_v5 = vld [vmem:[#allocation5 + $0x170] sm:$0xff]  ;;  %v649_v6 = vld [vmem:[#allocation5 + $0x188] sm:$0xff]  ;;  %v648_v10 = vld [vmem:[#allocation5 + $0x180] sm:$0xff] }
  0x68   :  { %v1253_v8 = vpack.c.bf16 %v646_v5, %v644_v4  ;;  %v1255_v9 = vpack.c.bf16 %v651_v7, %v649_v6  ;;  %v652_v16 = vld [vmem:[#allocation5 + $0x1a0] sm:$0xff]  ;;  %v495_v63 = vld [vmem:[#allocation2 + $0x90] sm:$0xff]  ;;  %v500_v4 = vld [vmem:[#allocation2 + $0xb8] sm:$0xff] }
  0x69   :  { %1131 = vmatmul.mubr.msk.f32.gmra.mrb[2].mxu0 %vm132_vm0, %v100_v21  ;;  %v617_v21 = vld [vmem:[#allocation5 + $0x88] sm:$0xff]  ;;  %v493_v62 = vld [vmem:[#allocation2 + $0x80] sm:$0xff] }
  0x6a   :  { %1133 = vmatprep.mubr.msk.f32.mxu0 %vm132_vm0, %v101_v22  ;;  %1214 = vmatpush1.bf16.msra.mxu0 %v1213_v11  ;;  %v619_v22 = vld [vmem:[#allocation5 + $0x98] sm:$0xff]  ;;  %v650_v11 = vld [vmem:[#allocation5 + $0x190] sm:$0xff]  ;;  %v1193_v7 = vpack.c.bf16 %v495_v63, %v493_v62 }
  0x6b   :  { %1216 = vmatprep.subr.bf16.mxu0 %v1215_v12  ;;  %v653_v12 = vld [vmem:[#allocation5 + $0x1a8] sm:$0xff]  ;;  %v1257_v14 = vpack.c.bf16 %v650_v11, %v648_v10  ;;  %v761_v62 = vld [vmem:[#allocation7 + $0x10] sm:$0xff] }
  0x6c   :  { %v1259_v15 = vpack.c.bf16 %v655_v13, %v653_v12 }
  0x6d   :  { %1134 = vmatmul.mubr.msk.f32.gmra.mrb[4].mxu0 %vm132_vm0, %v102_v23  ;;  %v1221_v23 = vpack.c.bf16 %v614_v20, %v612_v19  ;;  %v659_v19 = vld [vmem:[#allocation5 + $0x1d8] sm:$0xff] }
  0x6e   :  { %1136 = vmatprep.mubr.msk.f32.mxu0 %vm132_vm0, %v103_v24  ;;  %1218 = vmatpush1.bf16.msra.mxu0 %v1217_v17  ;;  %v1223_v24 = vpack.c.bf16 %v619_v22, %v617_v21  ;;  %v654_v17 = vld [vmem:[#allocation5 + $0x1b0] sm:$0xff]  ;;  %v1708_v22 = vld [vmem:[%s1789_s3] ss:$0 sm:$0xff] }
  0x6f   :  { %1220 = vmatprep.subr.bf16.mxu0 %v1219_v18  ;;  %v657_v18 = vld [vmem:[#allocation5 + $0x1c8] sm:$0xff]  ;;  %v1261_v20 = vpack.c.bf16 %v654_v17, %v652_v16  ;;  %v504_v16 = vld [vmem:[#allocation2 + $0xd8] sm:$0xff] }
  0x70   :  { %v1263_v21 = vpack.c.bf16 %v659_v19, %v657_v18 }
  0x71   :  { %1137 = vmatmul.mubr.msk.f32.gmra.mrb[6].mxu0 %vm132_vm0, %v104_v25  ;;  %v616_v25 = vld [vmem:[#allocation5 + $0x80] sm:$0xff] }
  0x72   :  { %1139 = vmatprep.mubr.msk.f32.mxu0 %vm132_vm0, %v105_v26  ;;  %v618_v26 = vld [vmem:[#allocation5 + $0x90] sm:$0xff]  ;;  %1222 = vmatpush1.bf16.msra.mxu0 %v1221_v23 }
  0x73   :  { %1224 = vmatprep.subr.bf16.mxu0 %v1223_v24 }
  0x75   :  { %1140 = vmatmul.mubr.msk.f32.gmra.mrb[8].mxu0 %vm132_vm0, %v106_v27  ;;  %v621_v27 = vld [vmem:[#allocation5 + $0xa8] sm:$0xff] }
  0x76   :  { %1142 = vmatprep.mubr.msk.f32.mxu0 %vm132_vm0, %v107_v28  ;;  %v623_v28 = vld [vmem:[#allocation5 + $0xb8] sm:$0xff] }
  0x79   :  { %1143 = vmatmul.mubr.msk.f32.gmra.mrb[10].mxu0 %vm132_vm0, %v108_v29  ;;  %v1225_v29 = vpack.c.bf16 %v618_v26, %v616_v25 }
  0x7a   :  { %1145 = vmatprep.mubr.msk.f32.mxu0 %vm132_vm0, %v109_v30  ;;  %v1227_v30 = vpack.c.bf16 %v623_v28, %v621_v27 }
  0x7b   :  { %1226 = vmatpush1.bf16.msra.mxu0 %v1225_v29 }
  0x7c   :  { %1228 = vmatprep.subr.bf16.mxu0 %v1227_v30 }
  0x7d   :  { %1146 = vmatmul.mubr.msk.f32.gmra.mrb[12].mxu0 %vm132_vm0, %v110_v31  ;;  %v620_v31 = vld [vmem:[#allocation5 + $0xa0] sm:$0xff] }
  0x7e   :  { %1148 = vmatprep.mubr.msk.f32.mxu0 %vm132_vm0, %v111_v32  ;;  %v622_v32 = vld [vmem:[#allocation5 + $0xb0] sm:$0xff] }
  0x7f   :  { %v1229_v35 = vpack.c.bf16 %v622_v32, %v620_v31 }
  0x81   :  { %1149 = vmatmul.mubr.msk.f32.gmra.mrb[14].mxu0 %vm132_vm0, %v112_v33  ;;  %v625_v33 = vld [vmem:[#allocation5 + $0xc8] sm:$0xff] }
  0x82   :  { %v1231_v36 = vpack.c.bf16 %v627_v34, %v625_v33  ;;  %1230 = vmatpush1.bf16.msra.mxu0 %v1229_v35 }
  0x84   :  { %1232 = vmatprep.subr.bf16.mxu0 %v1231_v36 }
  0x86   :  { %1234 = vmatpush1.bf16.msra.mxu0 %v1233_v41 }
  0x87   :  { %1236 = vmatprep.subr.bf16.mxu0 %v1235_v42 }
  0x8a   :  { %1238 = vmatpush1.bf16.msra.mxu0 %v1237_v47 }
  0x8b   :  { %1240 = vmatprep.subr.bf16.mxu0 %v1239_v48 }
  0x8e   :  { %1242 = vmatpush1.bf16.msra.mxu0 %v1241_v53 }
  0x8f   :  { %1244 = vmatprep.subr.bf16.mxu0 %v1243_v54 }
  0x92   :  { %1246 = vmatpush1.bf16.msra.mxu0 %v1245_v59 }
  0x93   :  { %1248 = vmatprep.subr.bf16.mxu0 %v1247_v60 }
  0x96   :  { %1250 = vmatpush1.bf16.msra.mxu0 %v1249_v2 }
  0x97   :  { %1252 = vmatprep.subr.bf16.mxu0 %v1251_v3  ;;  %v498_v3 = vld [vmem:[#allocation2 + $0xa8] sm:$0xff] }
  0x98   :  { %v1195_v13 = vpack.c.bf16 %v500_v4, %v498_v3 }
  0x9a   :  { %1254 = vmatpush1.bf16.msra.mxu0 %v1253_v8  ;;  %v497_v8 = vld [vmem:[#allocation2 + $0xa0] sm:$0xff] }
  0x9b   :  { %1256 = vmatprep.subr.bf16.mxu0 %v1255_v9 }
  0x9e   :  { %1258 = vmatpush1.bf16.msra.mxu0 %v1257_v14  ;;  %v499_v14 = vld [vmem:[#allocation2 + $0xb0] sm:$0xff] }
  0x9f   :  { %1260 = vmatprep.subr.bf16.mxu0 %v1259_v15  ;;  %v502_v15 = vld [vmem:[#allocation2 + $0xc8] sm:$0xff] }
  0xa2   :  { %1262 = vmatpush1.bf16.msra.mxu0 %v1261_v20 }
  0xa3   :  { %1264 = vmatprep.subr.bf16.mxu0 %v1263_v21 }
 0x138   :  { %v1129_v23 = vpop.f32.mrb[0].mxu0 }
 0x139   :  { %v253_v24 = vadd.f32 %v1129_v23, %v1708_v22  ;;  %v247_v25 = vpop.f32.mrb[1].mxu0  ;;  %v1197_v23 = vpack.c.bf16 %v499_v14, %v497_v8  ;;  %v768_v8 = vld [vmem:[#allocation7 + $0x48] sm:$0xff]  ;;  %v769_v14 = vld [vmem:[#allocation7 + $0x50] sm:$0xff] }
 0x13a   :  { %v248_v26 = vadd.f32 %v1708_v22, %v247_v25 }
 0x13b   :  { %v327_v28 = vmax.f32 %v253_v24, 0.0  ;;  %v1199_v24 = vpack.c.bf16 %v504_v16, %v502_v15  ;;  %v656_v16 = vld [vmem:[#allocation5 + $0x1c0] sm:$0xff] }
 0x13c   :  { %v1132_v27 = vpop.f32.mrb[2].mxu0  ;;  %v326_v31 = vmax.f32 %v248_v26, 0.0 }
 0x13d   :  { %v263_v29 = vadd.f32 %v1132_v27, %v1708_v22  ;;  %v257_v30 = vpop.f32.mrb[3].mxu0  ;;  %v364_v36 = vsel %vm356_vm1, %v327_v28, 0.0 }
 0x13e   :  { %v258_v32 = vadd.f32 %v1708_v22, %v257_v30  ;;  %v357_v40 = vsel %vm356_vm1, %v326_v31, 0.0  ;;  %v501_v30 = vld [vmem:[#allocation2 + $0xc0] sm:$0xff]  ;;  %v503_v31 = vld [vmem:[#allocation2 + $0xd0] sm:$0xff] }
 0x13f   :  { %v329_v33 = vmax.f32 %v263_v29, 0.0 }
 0x140   :  { %v328_v34 = vmax.f32 %v258_v32, 0.0  ;;  %v1135_v35 = vpop.f32.mrb[4].mxu0 }
 0x141   :  { %v365_v37 = vsel %vm356_vm1, %v329_v33, 0.0  ;;  %v273_v38 = vadd.f32 %v1135_v35, %v1708_v22  ;;  %v267_v39 = vpop.f32.mrb[5].mxu0 }
 0x142   :  { %v366_v41 = vadd.f32 %v365_v37, %v364_v36  ;;  %v358_v42 = vsel %vm356_vm1, %v328_v34, 0.0  ;;  %v268_v43 = vadd.f32 %v1708_v22, %v267_v39  ;;  %v506_v36 = vld [vmem:[#allocation2 + $0xe8] sm:$0xff]  ;;  %v508_v37 = vld [vmem:[#allocation2 + $0xf8] sm:$0xff] }
 0x143   :  { %v359_v44 = vadd.f32 %v358_v42, %v357_v40  ;;  %v331_v45 = vmax.f32 %v273_v38, 0.0  ;;  %v1201_v42 = vpack.c.bf16 %v503_v31, %v501_v30 }
 0x144   :  { %v330_v46 = vmax.f32 %v268_v43, 0.0  ;;  %v1138_v47 = vpop.f32.mrb[6].mxu0 }
 0x145   :  { %v367_v48 = vsel %vm356_vm1, %v331_v45, 0.0  ;;  %v283_v49 = vadd.f32 %v1138_v47, %v1708_v22  ;;  %v277_v50 = vpop.f32.mrb[7].mxu0  ;;  %v505_v47 = vld [vmem:[#allocation2 + $0xe0] sm:$0xff] }
 0x146   :  { %v368_v51 = vadd.f32 %v367_v48, %v366_v41  ;;  %v360_v52 = vsel %vm356_vm1, %v330_v46, 0.0  ;;  %v278_v53 = vadd.f32 %v1708_v22, %v277_v50  ;;  %v1203_v46 = vpack.c.bf16 %v508_v37, %v506_v36  ;;  %v507_v48 = vld [vmem:[#allocation2 + $0xf0] sm:$0xff]  ;;  %v878_v36 = vld [vmem:[#allocation8] sm:$0xff] }
 0x147   :  { %v361_v54 = vadd.f32 %v360_v52, %v359_v44  ;;  %v333_v55 = vmax.f32 %v283_v49, 0.0  ;;  %v760_v52 = vld [vmem:[#allocation7 + $0x8] sm:$0xff] }
 0x148   :  { %v332_v56 = vmax.f32 %v278_v53, 0.0  ;;  %v1141_v57 = vpop.f32.mrb[8].mxu0  ;;  %v762_v53 = vld [vmem:[#allocation7 + $0x18] sm:$0xff] }
 0x149   :  { %v369_v58 = vsel %vm356_vm1, %v333_v55, 0.0  ;;  %v293_v59 = vadd.f32 %v1141_v57, %v1708_v22  ;;  %v287_v60 = vpop.f32.mrb[9].mxu0  ;;  %v1205_v57 = vpack.c.bf16 %v507_v48, %v505_v47  ;;  %v882_v48 = vld [vmem:[#allocation8 + $0x20] sm:$0xff] }
 0x14a   :  { %v370_v0 = vadd.f32 %v369_v58, %v368_v51  ;;  %v362_v1 = vsel %vm356_vm1, %v332_v56, 0.0  ;;  %v288_v2 = vadd.f32 %v1708_v22, %v287_v60  ;;  %v759_v60 = vld [vmem:[#allocation7] sm:$0xff] }
 0x14b   :  { %v363_v5 = vadd.f32 %v362_v1, %v361_v54  ;;  %v335_v10 = vmax.f32 %v293_v59, 0.0  ;;  %v1271_v59 = vpack.c.bf16 %v762_v53, %v760_v52  ;;  %v764_v1 = vld [vmem:[#allocation7 + $0x28] sm:$0xff] }
 0x14c   :  { %v1144_v6 = vpop.f32.mrb[10].mxu0  ;;  %v334_v17 = vmax.f32 %v288_v2, 0.0  ;;  %v372_v25 = vmul.f32 0.25, %v370_v0  ;;  %v766_v2 = vld [vmem:[#allocation7 + $0x38] sm:$0xff] }
 0x14d   :  { %v371_v9 = vmul.f32 0.25, %v363_v5  ;;  %v303_v11 = vadd.f32 %v1144_v6, %v1708_v22  ;;  %v297_v12 = vpop.f32.mrb[11].mxu0  ;;  %v483_v26 = vsel %vm356_vm1, %v335_v10, 0.0  ;;  %v1275_v5 = vpack.c.bf16 %v766_v2, %v764_v1  ;;  %v763_v6 = vld [vmem:[#allocation7 + $0x20] sm:$0xff] }
 0x14e   :  { %v298_v18 = vadd.f32 %v1708_v22, %v297_v12  ;;  %v476_v32 = vsel %vm356_vm1, %v334_v17, 0.0  ;;  %v658_v17 = vld [vmem:[#allocation5 + $0x1d0] sm:$0xff] }
 0x14f   :  { %v337_v19 = vmax.f32 %v303_v11, 0.0  ;;  %1030 = vmatmul.mubr.msk.f32.vlgmr.msra.gmra.mrb[0].mxu1 %vm356_vm1, %v371_v9  ;;  %v770_v9 = vld [vmem:[#allocation7 + $0x58] sm:$0xff] }
 0x150   :  { %v336_v20 = vmax.f32 %v298_v18, 0.0  ;;  %v1147_v21 = vpop.f32.mrb[12].mxu0  ;;  %1194 = vmatpush1.bf16.msra.mxu1 %v1193_v7  ;;  %465 = vmatprep.mubr.f32.mxu1 %v1463_v61  ;;  %v765_v7 = vld [vmem:[#allocation7 + $0x30] sm:$0xff]  ;;  %v1279_v12 = vpack.c.bf16 %v770_v9, %v768_v8  ;;  %v1265_v18 = vpack.c.bf16 %v658_v17, %v656_v16  ;;  %v342_v8 = vld [vmem:[%s1791_s5] sm:$0x3] }
 0x151   :  { %v484_v27 = vsel %vm356_vm1, %v337_v19, 0.0  ;;  %v313_v28 = vadd.f32 %v1147_v21, %v1708_v22  ;;  %v307_v29 = vpop.f32.mrb[13].mxu0  ;;  %1196 = vmatprep.subr.bf16.mxu1 %v1195_v13  ;;  %v1277_v10 = vpack.c.bf16 %v765_v7, %v763_v6  ;;  %v767_v13 = vld [vmem:[#allocation7 + $0x40] sm:$0xff]  ;;  %v772_v19 = vld [vmem:[#allocation7 + $0x68] sm:$0xff] }
 0x152   :  { %v485_v33 = vadd.f32 %v484_v27, %v483_v26  ;;  %v477_v34 = vsel %vm356_vm1, %v336_v20, 0.0  ;;  %v308_v35 = vadd.f32 %v1708_v22, %v307_v29  ;;  %v1281_v15 = vpack.c.bf16 %v769_v14, %v767_v13  ;;  %v774_v20 = vld [vmem:[#allocation7 + $0x78] sm:$0xff]  ;;  %1266 = vmatpush1.bf16.msra.mxu0 %v1265_v18  ;;  %v773_v27 = vld [vmem:[#allocation7 + $0x70] sm:$0xff] }
 0x153   :  { %v478_v38 = vadd.f32 %v477_v34, %v476_v32  ;;  %v339_v39 = vmax.f32 %v313_v28, 0.0  ;;  %1031 = vmatmul.mubr.msk.f32.gmra.mrb[2].mxu1 %vm356_vm1, %v372_v25  ;;  %v1283_v21 = vpack.c.bf16 %v774_v20, %v772_v19  ;;  %v771_v25 = vld [vmem:[#allocation7 + $0x60] sm:$0xff]  ;;  %v662_v29 = vld [vmem:[#allocation5 + $0x1f0] sm:$0xff] }
 0x154   :  { %v338_v40 = vmax.f32 %v308_v35, 0.0  ;;  %v1150_v41 = vpop.f32.mrb[14].mxu0  ;;  %1198 = vmatpush1.bf16.msra.mxu1 %v1197_v23  ;;  %579 = vmatprep.mubr.f32.mxu1 %v1463_v61  ;;  %v661_v23 = vld [vmem:[#allocation5 + $0x1e8] sm:$0xff]  ;;  %v660_v28 = vld [vmem:[#allocation5 + $0x1e0] sm:$0xff]  ;;  %v1285_v30 = vpack.c.bf16 %v773_v27, %v771_v25 }
 0x155   :  { %v486_v43 = vsel %vm356_vm1, %v339_v39, 0.0  ;;  %v323_v44 = vadd.f32 %v1150_v41, %v1708_v22  ;;  %v317_v45 = vpop.f32.mrb[15].mxu0  ;;  %1200 = vmatprep.subr.bf16.mxu1 %v1199_v24  ;;  %v663_v24 = vld [vmem:[#allocation5 + $0x1f8] sm:$0xff]  ;;  %v1269_v31 = vpack.c.bf16 %v662_v29, %v660_v28  ;;  %v757_v32 = vld [vmem:[%s1787_s1] sm:$0xff]  ;;  %v895_v35 = vld [vmem:[#allocation8 + $0x88] sm:$0xff] }
 0x156   :  { %v487_v49 = vadd.f32 %v486_v43, %v485_v33  ;;  %v479_v50 = vsel %vm356_vm1, %v338_v40, 0.0  ;;  %v318_v51 = vadd.f32 %v1708_v22, %v317_v45  ;;  %v1273_v22 = vpack.c.bf16 %v761_v62, %v759_v60  ;;  %v758_v33 = vld [vmem:[%s1787_s1 + $0x8] sm:$0xff]  ;;  %v894_v34 = vld [vmem:[#allocation8 + $0x80] sm:$0xff]  ;;  %v896_v39 = vld [vmem:[#allocation8 + $0x90] sm:$0xff] }
 0x157   :  { %v480_v54 = vadd.f32 %v479_v50, %v478_v38  ;;  %v341_v55 = vmax.f32 %v323_v44, 0.0  ;;  %v1267_v26 = vpack.c.bf16 %v663_v24, %v661_v23  ;;  %v1287_v37 = vpack.c.bf16 %v895_v35, %v894_v34  ;;  %v879_v38 = vld [vmem:[#allocation8 + $0x8] sm:$0xff]  ;;  %v897_v40 = vld [vmem:[#allocation8 + $0x98] sm:$0xff]  ;;  %v880_v43 = vld [vmem:[#allocation8 + $0x10] sm:$0xff] }
 0x158   :  { %v340_v56 = vmax.f32 %v318_v51, 0.0  ;;  %1202 = vmatpush1.bf16.msra.mxu1 %v1201_v42  ;;  %v1289_v41 = vpack.c.bf16 %v879_v38, %v878_v36  ;;  %v1291_v42 = vpack.c.bf16 %v897_v40, %v896_v39  ;;  %v881_v44 = vld [vmem:[#allocation8 + $0x18] sm:$0xff]  ;;  %v898_v45 = vld [vmem:[#allocation8 + $0xa0] sm:$0xff]  ;;  %v900_v50 = vld [vmem:[#allocation8 + $0xb0] sm:$0xff] }
 0x159   :  { %v488_v58 = vsel %vm356_vm1, %v341_v55, 0.0  ;;  %1204 = vmatprep.subr.bf16.mxu1 %v1203_v46  ;;  %1268 = vmatprep.subr.bf16.mxu0 %v1267_v26  ;;  %v1293_v46 = vpack.c.bf16 %v881_v44, %v880_v43  ;;  %v901_v51 = vld [vmem:[#allocation8 + $0xb8] sm:$0xff]  ;;  %v886_v60 = vld [vmem:[#allocation8 + $0x40] sm:$0xff]  ;;  %v887_v62 = vld [vmem:[#allocation8 + $0x48] sm:$0xff] }
 0x15a   :  { %v489_v63 = vadd.f32 %v488_v58, %v487_v49  ;;  %v481_v0 = vsel %vm356_vm1, %v340_v56, 0.0  ;;  %1270 = vmatpush1.bf16.msra.mxu0 %v1269_v31  ;;  %v883_v49 = vld [vmem:[#allocation8 + $0x28] sm:$0xff]  ;;  %v1299_v53 = vpack.c.bf16 %v901_v51, %v900_v50  ;;  %v885_v55 = vld [vmem:[#allocation8 + $0x38] sm:$0xff]  ;;  %v902_v56 = vld [vmem:[#allocation8 + $0xc0] sm:$0xff]  ;;  %v1305_v1 = vpack.c.bf16 %v887_v62, %v886_v60 }
 0x15b   :  { %v482_v3 = vadd.f32 %v481_v0, %v480_v54  ;;  %v1297_v52 = vpack.c.bf16 %v883_v49, %v882_v48  ;;  %v884_v54 = vld [vmem:[#allocation8 + $0x30] sm:$0xff]  ;;  %v905_v0 = vld [vmem:[#allocation8 + $0xd8] sm:$0xff]  ;;  %v906_v25 = vld [vmem:[#allocation8 + $0xe0] sm:$0xff] }
 0x15c   :  { %1206 = vmatpush1.bf16.msra.mxu1 %v1205_v57  ;;  %v491_v11 = vmul.f32 0.25, %v489_v63  ;;  %v903_v57 = vld [vmem:[#allocation8 + $0xc8] sm:$0xff]  ;;  %v1301_v58 = vpack.c.bf16 %v885_v55, %v884_v54  ;;  %v904_v63 = vld [vmem:[#allocation8 + $0xd0] sm:$0xff]  ;;  %v890_v28 = vld [vmem:[#allocation8 + $0x60] sm:$0xff] }
 0x15d   :  { %v490_v4 = vmul.f32 0.25, %v482_v3  ;;  %1272 = vmatprep.subr.bf16.mxu1 %v1271_v59  ;;  %v1303_v59 = vpack.c.bf16 %v903_v57, %v902_v56  ;;  %v1307_v2 = vpack.c.bf16 %v905_v0, %v904_v63  ;;  %v888_v3 = vld [vmem:[#allocation8 + $0x50] sm:$0xff]  ;;  %v907_v26 = vld [vmem:[#allocation8 + $0xe8] sm:$0xff]  ;;  %v909_v34 = vld [vmem:[#allocation8 + $0xf8] sm:$0xff] }
 0x15e   :  { %v1311_v27 = vpack.c.bf16 %v907_v26, %v906_v25  ;;  %v891_v29 = vld [vmem:[#allocation8 + $0x68] sm:$0xff]  ;;  %v892_v36 = vld [vmem:[#allocation8 + $0x70] sm:$0xff]  ;;  %v664_v43 = vld [vmem:[%s1793_s7] sm:$0x3] }
 0x15f   :  { %1032 = vmatmul.mubr.msk.f32.vlgmr.msra.gmra.mrb[0].mxu1 %vm356_vm1, %v490_v4  ;;  %v1313_v31 = vpack.c.bf16 %v891_v29, %v890_v28 }
 0x160   :  { %585 = vmatprep.mubr.f32.mxu1 %v1463_v61  ;;  %1274 = vmatpush1.bf16.msra.mxu1 %v1273_v22  ;;  %v889_v22 = vld [vmem:[#allocation8 + $0x58] sm:$0xff] }
 0x161   :  { %1276 = vmatprep.subr.bf16.mxu1 %v1275_v5  ;;  %v1309_v4 = vpack.c.bf16 %v889_v22, %v888_v3  ;;  %v344_v5 = vlaneseq }
 0x163   :  { %1033 = vmatmul.mubr.msk.f32.gmra.mrb[2].mxu1 %vm356_vm1, %v491_v11  ;;  %v345_v6 = vshrl.u32 %v344_v5, 7 }
 0x164   :  { %1278 = vmatpush1.bf16.msra.mxu1 %v1277_v10  ;;  %857 = vmatprep.mubr.f32.mxu1 %v1463_v61 }
 0x165   :  { %1280 = vmatprep.subr.bf16.mxu1 %v1279_v12  ;;  %v346_v7 = vsub.s32 0, %v345_v6  ;;  %v350_v9 = vsub.s32 1, %v345_v6 }
 0x167   :  { %v347_v10 = vrot.slane %v342_v8, %v346_v7  ;;  %v351_v11 = vrot.slane %v342_v8, %v350_v9 }
 0x168   :  { %1282 = vmatpush1.bf16.msra.mxu1 %v1281_v15 }
 0x169   :  { %1284 = vmatprep.subr.bf16.mxu1 %v1283_v21 }
 0x16c   :  { %1286 = vmatpush1.bf16.msra.mxu1 %v1285_v30 }
 0x16d   :  { %1288 = vmatprep.subr.bf16.mxu1 %v1287_v37  ;;  %v893_v37 = vld [vmem:[#allocation8 + $0x78] sm:$0xff] }
 0x16e   :  { %v1317_v39 = vpack.c.bf16 %v893_v37, %v892_v36 }
 0x16f   :  { %1034 = vmatmul.mubr.msk.f32.vlgmr.msra.gmra.mrb[4].mxu1 %vm356_vm1, %v757_v32 }
 0x170   :  { %863 = vmatprep.mubr.f32.mxu1 %v1463_v61  ;;  %v899_v61 = vld [vmem:[#allocation8 + $0xa8] sm:$0xff]  ;;  %1290 = vmatpush3.bf16.msra.mxu1 %v1289_v41  ;;  %v775_v41 = vld [vmem:[%s1795_s9] sm:$0x3] }
 0x171   :  { %1292 = vmatprep.subr.bf16.mxu1 %v1291_v42  ;;  %v1295_v47 = vpack.c.bf16 %v899_v61, %v898_v45  ;;  %v780_v42 = vrot.slane %v775_v41, %v346_v7  ;;  %v784_v44 = vrot.slane %v775_v41, %v350_v9  ;;  %v669_v61 = vrot.slane %v664_v43, %v346_v7  ;;  %v1036_v7 = vld [vmem:[%s1797_s11] ss:$0 sm:$0xff] }
 0x173   :  { %1035 = vmatmul.mubr.msk.f32.gmra.mrb[6].mxu1 %vm356_vm1, %v758_v33  ;;  %v908_v33 = vld [vmem:[#allocation8 + $0xf0] sm:$0xff] }
 0x174   :  { %1294 = vmatpush3.bf16.msra.mxu1 %v1293_v46  ;;  %v1315_v35 = vpack.c.bf16 %v909_v34, %v908_v33 }
 0x175   :  { %1296 = vmatprep.subr.bf16.mxu1 %v1295_v47  ;;  %v673_v47 = vrot.slane %v664_v43, %v350_v9 }
 0x178   :  { %1298 = vmatpush3.bf16.msra.mxu1 %v1297_v52 }
 0x179   :  { %1300 = vmatprep.subr.bf16.mxu1 %v1299_v53 }
 0x17c   :  { %1302 = vmatpush3.bf16.msra.mxu1 %v1301_v58 }
 0x17d   :  { %1304 = vmatprep.subr.bf16.mxu1 %v1303_v59 }
 0x180   :  { %1306 = vmatpush3.bf16.msra.mxu1 %v1305_v1 }
 0x181   :  { %1308 = vmatprep.subr.bf16.mxu1 %v1307_v2 }
 0x184   :  { %1310 = vmatpush3.bf16.msra.mxu1 %v1309_v4 }
 0x185   :  { %1312 = vmatprep.subr.bf16.mxu1 %v1311_v27 }
 0x188   :  { %1314 = vmatpush3.bf16.msra.mxu1 %v1313_v31 }
 0x189   :  { %1316 = vmatprep.subr.bf16.mxu1 %v1315_v35 }
 0x18c   :  { %1318 = vmatpush3.bf16.msra.mxu1 %v1317_v39 }
 0x232   :  { %v581_v12 = vpop.f32.mrb[0].mxu1 }
 0x233   :  { %v1319_v13 = vadd.f32 %v581_v12, %v347_v10  ;;  %v583_v14 = vpop.f32.mrb[1].mxu1 }
 0x234   :  { %v1320_v15 = vadd.f32 %v583_v14, %v351_v11 }
 0x235   :  { %v596_v18 = vmax.f32 %v1319_v13, 0.0 }
 0x236   :  { %v597_v16 = vmax.f32 %v1320_v15, 0.0  ;;  %v587_v17 = vpop.f32.mrb[2].mxu1 }
 0x237   :  { %v1321_v19 = vadd.f32 %v587_v17, %v347_v10  ;;  %v589_v20 = vpop.f32.mrb[3].mxu1 }
 0x238   :  { %v1322_v21 = vadd.f32 %v589_v20, %v351_v11  ;;  %740 = vmatprep.mubr.f32.mxu0 %v597_v16 }
 0x239   :  { %741 = vmatmul.mubr.f32.vlgmr.msra.gmra.mrb[16].mxu0 %v596_v18  ;;  %v598_v24 = vmax.f32 %v1321_v19, 0.0 }
 0x23a   :  { %v599_v23 = vmax.f32 %v1322_v21, 0.0 }
 0x23c   :  { %746 = vmatprep.mubr.f32.mxu0 %v599_v23 }
 0x23d   :  { %747 = vmatmul.mubr.f32.gmra.mrb[18].mxu0 %v598_v24 }
 0x242   :  { %v859_v30 = vpop.f32.mrb[4].mxu1 }
 0x243   :  { %v861_v32 = vpop.f32.mrb[5].mxu1  ;;  %v860_v45 = vadd.f32 %v859_v30, %v780_v42 }
 0x244   :  { %v862_v46 = vadd.f32 %v861_v32, %v784_v44 }
 0x245   :  { %v870_v49 = vmax.f32 %v860_v45, 0.0 }
 0x246   :  { %v865_v38 = vpop.f32.mrb[6].mxu1  ;;  %v871_v53 = vmax.f32 %v862_v46, 0.0 }
 0x247   :  { %v867_v40 = vpop.f32.mrb[7].mxu1  ;;  %v866_v52 = vadd.f32 %v865_v38, %v780_v42 }
 0x248   :  { %v868_v55 = vadd.f32 %v867_v40, %v784_v44 }
 0x249   :  { %v872_v60 = vmax.f32 %v866_v52, 0.0 }
 0x24a   :  { %v873_v1 = vmax.f32 %v868_v55, 0.0 }
 0x30c   :  { %v742_v48 = vpop.f32.mrb[16].mxu0 }
 0x30d   :  { %v743_v50 = vadd.f32 %v742_v48, %v669_v61  ;;  %v744_v51 = vpop.f32.mrb[17].mxu0 }
 0x30e   :  { %v745_v54 = vadd.f32 %v744_v51, %v673_v47 }
 0x30f   :  { %v753_v56 = vmax.f32 %v743_v50, 0.0 }
 0x310   :  { %v754_v57 = vmax.f32 %v745_v54, 0.0  ;;  %v748_v58 = vpop.f32.mrb[18].mxu0 }
 0x311   :  { %v874_v59 = vadd.f32 %v870_v49, %v753_v56  ;;  %v749_v62 = vadd.f32 %v748_v58, %v669_v61  ;;  %v750_v63 = vpop.f32.mrb[19].mxu0 }
 0x312   :  { %v875_v0 = vadd.f32 %v871_v53, %v754_v57  ;;  %v751_v2 = vadd.f32 %v750_v63, %v673_v47 }
 0x313   :  { %v755_v3 = vmax.f32 %v749_v62, 0.0 }
 0x314   :  { %v756_v22 = vmax.f32 %v751_v2, 0.0  ;;  %981 = vmatprep.mubr.f32.mxu1 %v875_v0 }
 0x315   :  { %v876_v4 = vadd.f32 %v872_v60, %v755_v3  ;;  %982 = vmatmul.mubr.f32.vlgmr.msra.gmra.mrb[8].mxu1 %v874_v59 }
 0x316   :  { %v877_v5 = vadd.f32 %v873_v1, %v756_v22 }
 0x318   :  { %986 = vmatprep.mubr.f32.mxu1 %v877_v5 }
 0x319   :  { %987 = vmatmul.mubr.f32.gmra.mrb[10].mxu1 %v876_v4 }
 0x3e8   :  { %v1097_v6 = vpop.f32.mrb[8].mxu1 }
 0x3e9   :  { %v1098_v8 = vpop.f32.mrb[9].mxu1 }
 0x3ea   :  { %v1099_v9 = vadd.f32 %v1098_v8, %v1097_v6 }
 0x3ec   :  { %v984_v10 = vadd.f32 %v1099_v9, %v1036_v7  ;;  %v1100_v11 = vpop.f32.mrb[10].mxu1 }
 0x3ed   :  { %v1101_v12 = vpop.f32.mrb[11].mxu1 }
 0x3ee   :  { %992 = vst [vmem:[#allocation10] sm:$0xff] %v984_v10  ;;  %v1102_v13 = vadd.f32 %v1101_v12, %v1100_v11 }
 0x3f0   :  { %v989_v14 = vadd.f32 %v1102_v13, %v1036_v7 }
 0x3f2   :  { %993 = vst [vmem:[#allocation10 + $0x8] sm:$0xff] %v989_v14 }
 0x3f3   :  { %1436 = shalt.err (!%p1433_p8)
}
 0x3f4   :  { %s1437_s10 = scalar_lea.hbm %s1798_s12, 256 }
 0x3f5   :  { %p1438_p9 = scmp.ne.s32.totalorder %s1798_s12, %s1437_s10  ;;  %p1441_p10 = scmp.lt.u32.totalorder %s1437_s10, %s1798_s12 }
 0x3f7   :  { %p1443_p11 = pnand %p1441_p10, %p1438_p9 }
 0x3f9   :  { %1446 = shalt.err (!%p1443_p11)
}
 0x3fa   :  { %1005 = dma.vmem_to_hbm [thread:$0]  %s1000_s23, 256, %s1798_s12, [#allocation4], %s1461_s8, %s1461_s8, %s1462_s15  }
 0x3fb   :  { %1453 = dma.done.wait [#allocation4], 256  }
 0x3fc   :  { %1454 = vsyncadd [#allocation4], 4294967040 }
 0x3fd   :  { %1009 = vsyncpa [#allocation3], 1 }
 0x3fe   :  { %1010 = vsyncpa [#allocation6], 1 }
 0x3ff   :  { %1011 = vsyncpa [#allocation9], 1 }
 0x400   :  { %1012 = vsyncpa [#allocation4], 1 }

</bundles_post_ra>
